<compile_context>
chip_gen: v7x
topology: tpu7x:2x2x1
jax: 0.10.0
libtpu: 0.0.40
codegen_flags: <defaults>
</compile_context>

<pallas_src>
import functools

import numpy as np
import jax
import jax.numpy as jnp
from jax.experimental import pallas as pl
from jax.experimental.pallas import tpu as pltpu


def _round_up(x, m):
    return ((x + m - 1) // m) * m


# ----------------------------------------------------------------------------
# Pallas kernel: bf16 matmul on the MXU, fused shift (+residual) (+ReLU)
# ----------------------------------------------------------------------------
def _matmul_kernel(*refs, relu, has_res):
    if has_res:
        a_ref, b_ref, s_ref, r_ref, o_ref = refs
    else:
        a_ref, b_ref, s_ref, o_ref = refs
        r_ref = None
    acc = jnp.dot(a_ref[...], b_ref[...], preferred_element_type=jnp.float32)
    out = acc + s_ref[...]
    if r_ref is not None:
        out = out + r_ref[...].astype(jnp.float32)
    if relu:
        out = jnp.maximum(out, 0.0)
    o_ref[...] = out.astype(o_ref.dtype)


@functools.lru_cache(maxsize=None)
def _get_matmul(m_pad, k, n_pad, tm, tn, relu, has_res, out_dtype_name):
    out_dtype = jnp.dtype(out_dtype_name)
    in_specs = [
        pl.BlockSpec((tm, k), lambda i, j: (i, 0)),     # activations (resident over j)
        pl.BlockSpec((k, tn), lambda i, j: (0, j)),     # folded weights (stream over j)
        pl.BlockSpec((1, tn), lambda i, j: (0, j)),     # per-channel shift (f32)
    ]
    if has_res:
        in_specs.append(pl.BlockSpec((tm, tn), lambda i, j: (i, j)))  # residual
    kernel = functools.partial(_matmul_kernel, relu=relu, has_res=has_res)
    return pl.pallas_call(
        kernel,
        out_shape=jax.ShapeDtypeStruct((m_pad, n_pad), out_dtype),
        grid_spec=pltpu.PrefetchScalarGridSpec(
            num_scalar_prefetch=0,
            grid=(m_pad // tm, n_pad // tn),
            in_specs=in_specs,
            out_specs=pl.BlockSpec((tm, tn), lambda i, j: (i, j)),
        ),
        compiler_params=pltpu.CompilerParams(
            dimension_semantics=("parallel", "parallel"),
            vmem_limit_bytes=48 * 1024 * 1024,  # safe under v7x's 64 MiB / TC
        ),
    )


def matmul_bias(a, b, shift, relu, residual=None, out_dtype=jnp.bfloat16):
    """(M,K) @ (K,N) + shift(1,N) [+ residual(M,N)] [+ReLU]; bf16 in, f32 acc."""
    m, k = a.shape
    n = b.shape[1]

    # Tile selection: M padded to a multiple of tm (tm itself a multiple of 16),
    # N padded to a lane-dense multiple of 128.
    m16 = _round_up(max(m, 16), 16)
    tm = min(m16, 512)
    m_pad = _round_up(m, tm)
    n_pad = _round_up(n, 128)
    tn = 512 if n_pad % 512 == 0 else (256 if n_pad % 256 == 0 else 128)

    a = a.astype(jnp.bfloat16)
    if m_pad != m:
        a = jnp.pad(a, ((0, m_pad - m), (0, 0)))
    b = b.astype(jnp.bfloat16)
    shift = shift.reshape(1, -1).astype(jnp.float32)
    if n_pad != n:
        b = jnp.pad(b, ((0, 0), (0, n_pad - n)))
        shift = jnp.pad(shift, ((0, 0), (0, n_pad - n)))

    args = [a, b, shift]
    if residual is not None:
        r = residual.astype(jnp.bfloat16)
        r = jnp.pad(r, ((0, m_pad - m), (0, n_pad - n)))
        args.append(r)

    f = _get_matmul(m_pad, k, n_pad, tm, tn, bool(relu), residual is not None,
                    jnp.dtype(out_dtype).name)
    out = f(*args)
    return out[:m, :n]


# ----------------------------------------------------------------------------
# Glue (im2col, pooling, l2norm) — plain jnp, fused by XLA inside jit segments
# ----------------------------------------------------------------------------
def im2col(x, kh, kw, stride, pad):
    n, h, w, c = x.shape
    xp = jnp.pad(x, ((0, 0), (pad, pad), (pad, pad), (0, 0)))
    ho = (h + 2 * pad - kh) // stride + 1
    wo = (w + 2 * pad - kw) // stride + 1
    cols = []
    for di in range(kh):
        for dj in range(kw):
            cols.append(
                xp[:, di:di + stride * (ho - 1) + 1:stride,
                     dj:dj + stride * (wo - 1) + 1:stride, :]
            )
    patches = jnp.stack(cols, axis=3)              # (N, Ho, Wo, kh*kw, C)
    return patches.reshape(n * ho * wo, kh * kw * c), (n, ho, wo)


def conv_bn(x, w, shift, kh, kw, stride, pad, relu, residual=None,
            out_dtype=jnp.bfloat16):
    a, (n, ho, wo) = im2col(x, kh, kw, stride, pad)
    res2d = None
    if residual is not None:
        res2d = residual.reshape(n * ho * wo, -1)
    out = matmul_bias(a, w, shift, relu, residual=res2d, out_dtype=out_dtype)
    return out.reshape(n, ho, wo, -1)


def maxpool_3x3_s2(x):
    n, h, w, c = x.shape
    k, s, pad = 3, 2, 1
    ho = (h + 2 * pad - k) // s + 1
    wo = (w + 2 * pad - k) // s + 1
    xp = jnp.pad(x, ((0, 0), (pad, pad), (pad, pad), (0, 0)),
                 constant_values=-jnp.inf)
    out = None
    for di in range(k):
        for dj in range(k):
            win = xp[:, di:di + s * (ho - 1) + 1:s,
                       dj:dj + s * (wo - 1) + 1:s, :]
            out = win if out is None else jnp.maximum(out, win)
    return out


def avgpool_global(x):
    return jnp.mean(x.astype(jnp.float32), axis=(1, 2))   # (N, C)


# ----------------------------------------------------------------------------
# jit'd forward segments (identical-shape bottlenecks share one compile)
# ----------------------------------------------------------------------------
@jax.jit
def _stem(conv1_w, conv1_b, images_nchw):
    x = jnp.transpose(images_nchw, (0, 2, 3, 1)).astype(jnp.bfloat16)
    x = conv_bn(x, conv1_w, conv1_b, 7, 7, 2, 3, relu=True)
    return maxpool_3x3_s2(x)


@functools.partial(jax.jit, static_argnames=("stride",))
def _bottleneck(x, blk, *, stride):
    out = conv_bn(x, blk["w1"], blk["b1"], 1, 1, 1, 0, relu=True)
    out = conv_bn(out, blk["w2"], blk["b2"], 3, 3, stride, 1, relu=True)
    if "wd" in blk:
        identity = conv_bn(x, blk["wd"], blk["bd"], 1, 1, stride, 0, relu=False)
    else:
        identity = x
    # conv3 + BN shift + residual add + ReLU fused in one Pallas kernel.
    return conv_bn(out, blk["w3"], blk["b3"], 1, 1, 1, 0, relu=True,
                   residual=identity)


@jax.jit
def _head(x, fc_w, fc_b):
    feats = avgpool_global(x)                                       # (N, 2048) f32
    emb = matmul_bias(feats, fc_w, fc_b, relu=False,
                      out_dtype=jnp.float32)                        # (N, 128)
    # l2-normalize and scale by alpha=10 (hardcoded in the reference forward()).
    normp = jnp.sum(emb * emb, axis=1, keepdims=True) + 1e-10
    return emb * jax.lax.rsqrt(normp) * 10.0


def resnet101_center_forward(params, images_nchw):
    x = _stem(params["conv1_w"], params["conv1_b"], images_nchw)
    layer_strides = (1, 2, 2, 2)
    for li, blocks in enumerate(params["layers"]):
        for bi, blk in enumerate(blocks):
            x = _bottleneck(x, blk, stride=layer_strides[li] if bi == 0 else 1)
    return _head(x, params["fc_w"], params["fc_b"])


# ----------------------------------------------------------------------------
# Parameter init (deterministic synthetic weights) + BN folding / bf16 prep
# ----------------------------------------------------------------------------
def _conv_w(key, kh, kw, cin, cout):
    fan_in = kh * kw * cin
    return jax.random.normal(key, (kh * kw * cin, cout), jnp.float32) * np.sqrt(2.0 / fan_in)


def _make_bn(key, c):
    k1, k2 = jax.random.split(key)
    gamma = 1.0 + 0.01 * jax.random.normal(k1, (c,), jnp.float32)
    beta = 0.01 * jax.random.normal(k2, (c,), jnp.float32)
    mean = jnp.zeros((c,), jnp.float32)
    var = jnp.ones((c,), jnp.float32)
    return (gamma, beta, mean, var)


def init_resnet101_center_params(key, num_classes=10, embedding_dim=128):
    keys = iter(jax.random.split(key, 2048))
    p = {}
    p["conv1"] = _conv_w(next(keys), 7, 7, 3, 64)
    p["bn1"] = _make_bn(next(keys), 64)

    layers = []
    in_c = 64
    for planes, nblocks, stride in [(64, 3, 1), (128, 4, 2), (256, 23, 2), (512, 3, 2)]:
        blocks = []
        for b in range(nblocks):
            blk = {
                "w1": _conv_w(next(keys), 1, 1, in_c, planes),
                "bn1": _make_bn(next(keys), planes),
                "w2": _conv_w(next(keys), 3, 3, planes, planes),
                "bn2": _make_bn(next(keys), planes),
                "w3": _conv_w(next(keys), 1, 1, planes, planes * 4),
                "bn3": _make_bn(next(keys), planes * 4),
            }
            if b == 0:
                blk["wd"] = _conv_w(next(keys), 1, 1, in_c, planes * 4)
                blk["bnd"] = _make_bn(next(keys), planes * 4)
            blocks.append(blk)
            in_c = planes * 4
        layers.append(blocks)
    p["layers"] = layers

    p["fc_w"] = jax.random.normal(next(keys), (2048, embedding_dim), jnp.float32) * (1.0 / np.sqrt(2048))
    p["fc_b"] = 0.01 * jax.random.normal(next(keys), (embedding_dim,), jnp.float32)
    # Classifier exists on the module but is not used by forward(); kept for fidelity.
    p["cls_w"] = jax.random.normal(next(keys), (embedding_dim, num_classes), jnp.float32) * (1.0 / np.sqrt(embedding_dim))
    p["cls_b"] = jnp.zeros((num_classes,), jnp.float32)
    return p


def _fold_conv_bn(w, bn):
    gamma, beta, mean, var = bn
    inv_std = 1.0 / jnp.sqrt(var + 1e-5)
    scale = gamma * inv_std
    w_folded = (w * scale[None, :]).astype(jnp.bfloat16)
    shift = (beta - mean * scale).astype(jnp.float32)
    return w_folded, shift


def prepare_inference_params(p):
    """Fold BN scale into weights and cast matmul weights to bf16."""
    q = {}
    q["conv1_w"], q["conv1_b"] = _fold_conv_bn(p["conv1"], p["bn1"])
    layers = []
    for blocks in p["layers"]:
        fb = []
        for blk in blocks:
            d = {}
            d["w1"], d["b1"] = _fold_conv_bn(blk["w1"], blk["bn1"])
            d["w2"], d["b2"] = _fold_conv_bn(blk["w2"], blk["bn2"])
            d["w3"], d["b3"] = _fold_conv_bn(blk["w3"], blk["bn3"])
            if "wd" in blk:
                d["wd"], d["bd"] = _fold_conv_bn(blk["wd"], blk["bnd"])
            fb.append(d)
        layers.append(fb)
    q["layers"] = layers
    q["fc_w"] = p["fc_w"].astype(jnp.bfloat16)
    q["fc_b"] = p["fc_b"].astype(jnp.float32)
    return q


if __name__ == "__main__":
    key = jax.random.PRNGKey(0)
    pkey, xkey = jax.random.split(key)

    raw_params = init_resnet101_center_params(pkey, num_classes=10, embedding_dim=128)
    params = prepare_inference_params(raw_params)

    # Small input consistent with ResNet-101's 32x downsampling (batch=2, RGB, 32x32).
    images = jax.random.normal(xkey, (2, 3, 32, 32), jnp.float32)

    emb = resnet101_center_forward(params, images)
    emb = jax.block_until_ready(emb)

    assert emb.shape == (2, 128), emb.shape
    assert bool(jnp.all(jnp.isfinite(emb)))
    # Each row has L2 norm == alpha (=10) up to fp error.
    norms = jnp.sqrt(jnp.sum(emb * emb, axis=1))
    assert bool(jnp.all(jnp.abs(norms - 10.0) < 1e-2)), norms

    print("KERNEL_OK")
</pallas_src>

<mosaic_0001>
module attributes {stable_mosaic.version = 11 : i64} {
  func.func @_matmul_kernel(%arg0: i32, %arg1: i32, %arg2: memref<512x147xbf16, #tpu.memory_space<vmem>>, %arg3: memref<147x128xbf16, #tpu.memory_space<vmem>>, %arg4: memref<1x128xf32, #tpu.memory_space<vmem>>, %arg5: memref<512x128xbf16, #tpu.memory_space<vmem>>) attributes {dimension_semantics = [#tpu.dimension_semantics<parallel>, #tpu.dimension_semantics<parallel>], iteration_bounds = array<i64: 1, 1>, scalar_prefetch = 0 : i64, scratch_operands = 0 : i64, tpu.core_type = #tpu.core_type<tc>, window_params = [{transform_indices = @transform_0, window_bounds = array<i64: 512, 147>}, {transform_indices = @transform_1, window_bounds = array<i64: 147, 128>}, {transform_indices = @transform_2, window_bounds = array<i64: 1, 128>}, {transform_indices = @transform_3, window_bounds = array<i64: 512, 128>}]} {
    %c0 = arith.constant 0 : index
    %c0_0 = arith.constant 0 : index
    %0 = vector.load %arg2[%c0, %c0_0] : memref<512x147xbf16, #tpu.memory_space<vmem>>, vector<512x147xbf16>
    %c0_1 = arith.constant 0 : index
    %c0_2 = arith.constant 0 : index
    %1 = vector.load %arg3[%c0_1, %c0_2] : memref<147x128xbf16, #tpu.memory_space<vmem>>, vector<147x128xbf16>
    %cst = arith.constant dense<0.000000e+00> : vector<512x128xf32>
    %2 = tpu.matmul %0, %1, %cst {dimension_numbers = #tpu.dot_dimension_numbers<[1], [0], [0], [1], [0, 0, 1, 1], [], []>} : vector<512x147xbf16>, vector<147x128xbf16>, vector<512x128xf32> -> vector<512x128xf32>
    %c0_3 = arith.constant 0 : index
    %c0_4 = arith.constant 0 : index
    %3 = vector.load %arg4[%c0_3, %c0_4] : memref<1x128xf32, #tpu.memory_space<vmem>>, vector<1x128xf32>
    %4 = vector.broadcast %3 : vector<1x128xf32> to vector<512x128xf32>
    %5 = arith.addf %2, %4 : vector<512x128xf32>
    %cst_5 = arith.constant 0.000000e+00 : f32
    %6 = vector.broadcast %cst_5 : f32 to vector<512x128xf32>
    %7 = arith.maximumf %5, %6 : vector<512x128xf32>
    %8 = arith.truncf %7 : vector<512x128xf32> to vector<512x128xbf16>
    %c0_6 = arith.constant 0 : index
    %c0_7 = arith.constant 0 : index
    %9 = vector.load %arg5[%c0_6, %c0_7] : memref<512x128xbf16, #tpu.memory_space<vmem>>, vector<512x128xbf16>
    tpu.vector_store %arg5[%c0_6, %c0_7], %8 {strides = array<i32>} : memref<512x128xbf16, #tpu.memory_space<vmem>>, vector<512x128xbf16>,
    return
  }
  func.func @transform_0(%arg0: i32, %arg1: i32) -> (i32, i32) {
    %c0_i32 = arith.constant 0 : i32
    %c0_i32_0 = arith.constant 0 : i32
    return %arg0, %c0_i32 : i32, i32
  }
  func.func @transform_1(%arg0: i32, %arg1: i32) -> (i32, i32) {
    %c0_i32 = arith.constant 0 : i32
    %c0_i32_0 = arith.constant 0 : i32
    return %c0_i32, %arg1 : i32, i32
  }
  func.func @transform_2(%arg0: i32, %arg1: i32) -> (i32, i32) {
    %c0_i32 = arith.constant 0 : i32
    %c0_i32_0 = arith.constant 0 : i32
    return %c0_i32, %arg1 : i32, i32
  }
  func.func @transform_3(%arg0: i32, %arg1: i32) -> (i32, i32) {
    %c0_i32 = arith.constant 0 : i32
    return %arg0, %arg1 : i32, i32
  }
}

</mosaic_0001>

<bundles_post_ra>
// kernel: _stem.1
= control target key start
LH: loop header
LB: loop body
LE: loop exit
PB: predicated region body
PF: predicated region fallthrough
CT: control target
= control target key end

     0   :  { %v1785_v0 = vmov 0   ;;  %vm450_vm0 = vcmask 154624   ;;  %vm547_vm1 = vcmask 1040384   ;;  %vm548_vm2 = vcmask 1041408   ;;  %s2226_s1 = inlined_call_operand.vmem [shape: bf16[147,128], index: 1, kind: input, shape index: {}]   ;;  %s2227_s0 = inlined_call_operand.vmem [shape: bf16[512,147], index: 0, kind: input, shape index: {}]   ;;  %s2228_s2 = inlined_call_operand.vmem [shape: f32[1,128], index: 2, kind: input, shape index: {}]   ;;  %s2229_s3 = inlined_call_operand.vmem [shape: bf16[512,128], index: 3, kind: output, shape index: {}]  }
   0x1   :  { %554 = vmatprep.subr.bf16.mxu0 %v1785_v0  ;;  %1657 = vmatprep.subr.bf16.mxu1 %v1785_v0  ;;  %v1679_v1 = vld [vmem:[%s2226_s1] sm:$0xff]   ;;  %v1680_v2 = vld [vmem:[%s2226_s1 + $0x8] sm:$0xff]   ;;  %v1681_v3 = vld [vmem:[%s2226_s1 + $0x10] sm:$0xff]   ;;  %v1786_v11 = vmov 65535  }
   0x2   :  { %555 = vmatpush1.bf16.msra.mxu0 %v1679_v1  ;;  %1667 = vmatpush1.bf16.msra.mxu1 %v1679_v1  ;;  %v1682_v4 = vld [vmem:[%s2226_s1 + $0x18] sm:$0xff]   ;;  %v1691_v5 = vld [vmem:[%s2227_s0 + $0x4] ss:$8 sps:$4 sm:$0xff]   ;;  %v1685_v9 = vld [vmem:[%s2226_s1 + $0x30] sm:$0xff]   ;;  %v549_v12 = vsel %vm547_vm1, 4294967295, %v1786_v11 }
   0x3   :  { %556 = vmatprep.subr.bf16.mxu0 %v1785_v0  ;;  %1658 = vmatprep.subr.bf16.mxu1 %v1785_v0  ;;  %v1694_v6 = vld [vmem:[%s2227_s0 + $0x104] ss:$8 sps:$4 sm:$0xff]   ;;  %v1686_v10 = vld [vmem:[%s2226_s1 + $0x38] sm:$0xff]   ;;  %v1688_v14 = vld [vmem:[%s2226_s1 + $0x48] ss:$0 sps:$4 sm:$0x33]  }
   0x4   :  { %1306 = vmatprep.mubr.msk.bf16.mxu0 %vm450_vm0, %v1691_v5  ;;  %v1683_v7 = vld [vmem:[%s2226_s1 + $0x20] sm:$0xff]   ;;  %1322 = vmatprep.mubr.msk.bf16.mxu1 %vm450_vm0, %v1694_v6  ;;  %v1684_v8 = vld [vmem:[%s2226_s1 + $0x28] sm:$0xff]   ;;  %v550_v15 = vsel %vm548_vm2, %v549_v12, 0  ;;  %v1695_v19 = vld [vmem:[%s2227_s0 + $0x14] ss:$8 sps:$4 sm:$0xff]  }
   0x5   :  { %v1687_v13 = vld [vmem:[%s2226_s1 + $0x40] sm:$0xff]   ;;  %v552_v16 = vand.u32 %v1688_v14, %v550_v15  ;;  %v1697_v20 = vld [vmem:[%s2227_s0 + $0x114] ss:$8 sps:$4 sm:$0xff]   ;;  %v1699_v21 = vld [vmem:[%s2227_s0 + $0x10] ss:$8 sps:$4 sm:$0xff]  }
   0x6   :  { %557 = vmatpush1.bf16.msra.mxu0 %v1680_v2  ;;  %1668 = vmatpush1.bf16.msra.mxu1 %v1680_v2  ;;  %v1689_v17 = vld [vmem:[%s2227_s0] ss:$8 sps:$4 sm:$0xff]   ;;  %v1700_v22 = vld [vmem:[%s2227_s0 + $0x110] ss:$8 sps:$4 sm:$0xff]   ;;  %v1701_v23 = vld [vmem:[%s2227_s0 + $0x24] ss:$8 sps:$4 sm:$0xff]  }
   0x7   :  { %558 = vmatprep.subr.bf16.mxu0 %v1785_v0  ;;  %1659 = vmatprep.subr.bf16.mxu1 %v1785_v0  ;;  %v1692_v18 = vld [vmem:[%s2227_s0 + $0x100] ss:$8 sps:$4 sm:$0xff]   ;;  %v1703_v24 = vld [vmem:[%s2227_s0 + $0x124] ss:$8 sps:$4 sm:$0xff]   ;;  %v1707_v27 = vld [vmem:[%s2227_s0 + $0x34] ss:$8 sps:$4 sm:$0xff]  }
   0x8   :  { %v1705_v25 = vld [vmem:[%s2227_s0 + $0x20] ss:$8 sps:$4 sm:$0xff]   ;;  %v1709_v28 = vld [vmem:[%s2227_s0 + $0x134] ss:$8 sps:$4 sm:$0xff]   ;;  %v1711_v29 = vld [vmem:[%s2227_s0 + $0x30] ss:$8 sps:$4 sm:$0xff]  }
   0x9   :  { %v1706_v26 = vld [vmem:[%s2227_s0 + $0x120] ss:$8 sps:$4 sm:$0xff]   ;;  %v1712_v30 = vld [vmem:[%s2227_s0 + $0x130] ss:$8 sps:$4 sm:$0xff]   ;;  %v1713_v31 = vld [vmem:[%s2227_s0 + $0x44] ss:$8 sps:$4 sm:$0xff]  }
   0xa   :  { %559 = vmatpush1.bf16.msra.mxu0 %v1681_v3  ;;  %1669 = vmatpush1.bf16.msra.mxu1 %v1681_v3  ;;  %v1715_v32 = vld [vmem:[%s2227_s0 + $0x144] ss:$8 sps:$4 sm:$0xff]   ;;  %v1717_v33 = vld [vmem:[%s2227_s0 + $0x40] ss:$8 sps:$4 sm:$0xff]   ;;  %v1719_v35 = vld [vmem:[%s2227_s0 + $0x54] ss:$8 sps:$4 sm:$0xff]  }
   0xb   :  { %560 = vmatprep.subr.bf16.mxu0 %v1785_v0  ;;  %1660 = vmatprep.subr.bf16.mxu1 %v1785_v0  ;;  %v1718_v34 = vld [vmem:[%s2227_s0 + $0x140] ss:$8 sps:$4 sm:$0xff]   ;;  %v1721_v36 = vld [vmem:[%s2227_s0 + $0x154] ss:$8 sps:$4 sm:$0xff]   ;;  %v1723_v37 = vld [vmem:[%s2227_s0 + $0x50] ss:$8 sps:$4 sm:$0xff]  }
   0xc   :  { %v1724_v38 = vld [vmem:[%s2227_s0 + $0x150] ss:$8 sps:$4 sm:$0xff]   ;;  %v1725_v39 = vld [vmem:[%s2227_s0 + $0x64] ss:$8 sps:$4 sm:$0xff]   ;;  %v1729_v41 = vld [vmem:[%s2227_s0 + $0x60] ss:$8 sps:$4 sm:$0xff]  }
   0xd   :  { %v1727_v40 = vld [vmem:[%s2227_s0 + $0x164] ss:$8 sps:$4 sm:$0xff]   ;;  %v1730_v42 = vld [vmem:[%s2227_s0 + $0x160] ss:$8 sps:$4 sm:$0xff]   ;;  %v1731_v43 = vld [vmem:[%s2227_s0 + $0x74] ss:$8 sps:$4 sm:$0xff]  }
   0xe   :  { %561 = vmatpush1.bf16.msra.mxu0 %v1682_v4  ;;  %1670 = vmatpush1.bf16.msra.mxu1 %v1682_v4  ;;  %v1733_v44 = vld [vmem:[%s2227_s0 + $0x174] ss:$8 sps:$4 sm:$0xff]   ;;  %v1735_v45 = vld [vmem:[%s2227_s0 + $0x70] ss:$8 sps:$4 sm:$0xff]   ;;  %v1737_v47 = vld [vmem:[%s2227_s0 + $0x84] ss:$8 sps:$4 sm:$0xff]  }
   0xf   :  { %562 = vmatprep.subr.bf16.mxu0 %v1785_v0  ;;  %1661 = vmatprep.subr.bf16.mxu1 %v1785_v0  ;;  %v1736_v46 = vld [vmem:[%s2227_s0 + $0x170] ss:$8 sps:$4 sm:$0xff]   ;;  %v1739_v48 = vld [vmem:[%s2227_s0 + $0x184] ss:$8 sps:$4 sm:$0xff]   ;;  %v1741_v49 = vld [vmem:[%s2227_s0 + $0x80] ss:$8 sps:$4 sm:$0xff]  }
  0x10   :  { %v1742_v50 = vld [vmem:[%s2227_s0 + $0x180] ss:$8 sps:$4 sm:$0xff]   ;;  %v1743_v51 = vld [vmem:[%s2227_s0 + $0x94] ss:$8 sps:$4 sm:$0xff]   ;;  %v1747_v53 = vld [vmem:[%s2227_s0 + $0x90] ss:$8 sps:$4 sm:$0xff]  }
  0x11   :  { %v1745_v52 = vld [vmem:[%s2227_s0 + $0x194] ss:$8 sps:$4 sm:$0xff]   ;;  %v1748_v54 = vld [vmem:[%s2227_s0 + $0x190] ss:$8 sps:$4 sm:$0xff]   ;;  %v1749_v55 = vld [vmem:[%s2227_s0 + $0xa4] ss:$8 sps:$4 sm:$0xff]  }
  0x12   :  { %563 = vmatpush1.bf16.msra.mxu0 %v1683_v7  ;;  %1671 = vmatpush1.bf16.msra.mxu1 %v1683_v7  ;;  %v1751_v56 = vld [vmem:[%s2227_s0 + $0x1a4] ss:$8 sps:$4 sm:$0xff]   ;;  %v1753_v57 = vld [vmem:[%s2227_s0 + $0xa0] ss:$8 sps:$4 sm:$0xff]   ;;  %v1755_v59 = vld [vmem:[%s2227_s0 + $0xb4] ss:$8 sps:$4 sm:$0xff]  }
  0x13   :  { %564 = vmatprep.subr.bf16.mxu0 %v1785_v0  ;;  %1662 = vmatprep.subr.bf16.mxu1 %v1785_v0  ;;  %v1754_v58 = vld [vmem:[%s2227_s0 + $0x1a0] ss:$8 sps:$4 sm:$0xff]   ;;  %v1757_v60 = vld [vmem:[%s2227_s0 + $0x1b4] ss:$8 sps:$4 sm:$0xff]   ;;  %v1759_v61 = vld [vmem:[%s2227_s0 + $0xb0] ss:$8 sps:$4 sm:$0xff]  }
  0x14   :  { %v1760_v62 = vld [vmem:[%s2227_s0 + $0x1b0] ss:$8 sps:$4 sm:$0xff]   ;;  %v1761_v63 = vld [vmem:[%s2227_s0 + $0xc4] ss:$8 sps:$4 sm:$0xff]   ;;  %v1765_v1 = vld [vmem:[%s2227_s0 + $0xc0] ss:$8 sps:$4 sm:$0xff]  }
  0x15   :  { %v1766_v2 = vld [vmem:[%s2227_s0 + $0x1c0] ss:$8 sps:$4 sm:$0xff]   ;;  %v1767_v3 = vld [vmem:[%s2227_s0 + $0xd4] ss:$8 sps:$4 sm:$0xff]   ;;  %v1771_v5 = vld [vmem:[%s2227_s0 + $0xd0] ss:$8 sps:$4 sm:$0xff]  }
  0x16   :  { %565 = vmatpush1.bf16.msra.mxu0 %v1684_v8  ;;  %1672 = vmatpush1.bf16.msra.mxu1 %v1684_v8  ;;  %v1769_v4 = vld [vmem:[%s2227_s0 + $0x1d4] ss:$8 sps:$4 sm:$0xff]   ;;  %v1772_v6 = vld [vmem:[%s2227_s0 + $0x1d0] ss:$8 sps:$4 sm:$0xff]   ;;  %v1773_v7 = vld [vmem:[%s2227_s0 + $0xe4] ss:$8 sps:$4 sm:$0xff]  }
  0x17   :  { %566 = vmatprep.subr.bf16.mxu0 %v1785_v0  ;;  %1663 = vmatprep.subr.bf16.mxu1 %v1785_v0  ;;  %v1775_v8 = vld [vmem:[%s2227_s0 + $0x1e4] ss:$8 sps:$4 sm:$0xff]   ;;  %v1779_v11 = vld [vmem:[%s2227_s0 + $0xf4] ss:$8 sps:$4 sm:$0xff]   ;;  %v1784_v14 = vld [vmem:[%s2227_s0 + $0x1f0] ss:$8 sps:$4 sm:$0xff]  }
  0x18   :  { %v1781_v12 = vld [vmem:[%s2227_s0 + $0x1f4] ss:$8 sps:$4 sm:$0xff]   ;;  %v2064_v15 = vld [vmem:[%s2228_s2] ss:$0 sm:$0xff] }
  0x1a   :  { %567 = vmatpush1.bf16.msra.mxu0 %v1685_v9  ;;  %1673 = vmatpush1.bf16.msra.mxu1 %v1685_v9  ;;  %v1777_v9 = vld [vmem:[%s2227_s0 + $0xe0] ss:$8 sps:$4 sm:$0xff]  }
  0x1b   :  { %568 = vmatprep.subr.bf16.mxu0 %v1785_v0  ;;  %1664 = vmatprep.subr.bf16.mxu1 %v1785_v0 }
  0x1e   :  { %569 = vmatpush1.bf16.msra.mxu0 %v1686_v10  ;;  %1674 = vmatpush1.bf16.msra.mxu1 %v1686_v10  ;;  %v1778_v10 = vld [vmem:[%s2227_s0 + $0x1e0] ss:$8 sps:$4 sm:$0xff]  }
  0x1f   :  { %570 = vmatprep.subr.bf16.mxu0 %v1785_v0  ;;  %1665 = vmatprep.subr.bf16.mxu1 %v1785_v0 }
  0x22   :  { %571 = vmatpush1.bf16.msra.mxu0 %v1687_v13  ;;  %1675 = vmatpush1.bf16.msra.mxu1 %v1687_v13  ;;  %v1783_v13 = vld [vmem:[%s2227_s0 + $0xf0] ss:$8 sps:$4 sm:$0xff]  }
  0x23   :  { %572 = vmatprep.subr.bf16.mxu0 %v1785_v0  ;;  %1666 = vmatprep.subr.bf16.mxu1 %v1785_v0  ;;  %v1763_v0 = vld [vmem:[%s2227_s0 + $0x1c4] ss:$8 sps:$4 sm:$0xff]  }
  0x26   :  { %573 = vmatpush1.bf16.msra.mxu0 %v552_v16  ;;  %1676 = vmatpush1.bf16.msra.mxu1 %v552_v16 }
  0x29   :  { %587 = vmatmul.mubr.bf16.vlgmr.msra.gmra.mrb[0].mxu0 %v1689_v17  ;;  %715 = vmatmul.mubr.bf16.vlgmr.msra.gmra.mrb[0].mxu1 %v1692_v18 }
  0x2a   :  { %1307 = vmatprep.mubr.msk.bf16.mxu0 %vm450_vm0, %v1695_v19  ;;  %1323 = vmatprep.mubr.msk.bf16.mxu1 %vm450_vm0, %v1697_v20 }
  0x31   :  { %595 = vmatmul.mubr.bf16.gmra.mrb[4].mxu0 %v1699_v21  ;;  %723 = vmatmul.mubr.bf16.gmra.mrb[4].mxu1 %v1700_v22 }
  0x32   :  { %1308 = vmatprep.mubr.msk.bf16.mxu0 %vm450_vm0, %v1701_v23  ;;  %1324 = vmatprep.mubr.msk.bf16.mxu1 %vm450_vm0, %v1703_v24 }
  0x39   :  { %603 = vmatmul.mubr.bf16.gmra.mrb[8].mxu0 %v1705_v25  ;;  %731 = vmatmul.mubr.bf16.gmra.mrb[8].mxu1 %v1706_v26 }
  0x3a   :  { %1309 = vmatprep.mubr.msk.bf16.mxu0 %vm450_vm0, %v1707_v27  ;;  %1325 = vmatprep.mubr.msk.bf16.mxu1 %vm450_vm0, %v1709_v28 }
  0x41   :  { %611 = vmatmul.mubr.bf16.gmra.mrb[12].mxu0 %v1711_v29  ;;  %739 = vmatmul.mubr.bf16.gmra.mrb[12].mxu1 %v1712_v30 }
  0x42   :  { %1310 = vmatprep.mubr.msk.bf16.mxu0 %vm450_vm0, %v1713_v31  ;;  %1326 = vmatprep.mubr.msk.bf16.mxu1 %vm450_vm0, %v1715_v32 }
  0x49   :  { %619 = vmatmul.mubr.bf16.gmra.mrb[16].mxu0 %v1717_v33  ;;  %747 = vmatmul.mubr.bf16.gmra.mrb[16].mxu1 %v1718_v34 }
  0x4a   :  { %1311 = vmatprep.mubr.msk.bf16.mxu0 %vm450_vm0, %v1719_v35  ;;  %1327 = vmatprep.mubr.msk.bf16.mxu1 %vm450_vm0, %v1721_v36 }
  0x51   :  { %627 = vmatmul.mubr.bf16.gmra.mrb[20].mxu0 %v1723_v37  ;;  %755 = vmatmul.mubr.bf16.gmra.mrb[20].mxu1 %v1724_v38 }
  0x52   :  { %1312 = vmatprep.mubr.msk.bf16.mxu0 %vm450_vm0, %v1725_v39  ;;  %1328 = vmatprep.mubr.msk.bf16.mxu1 %vm450_vm0, %v1727_v40 }
  0x59   :  { %635 = vmatmul.mubr.bf16.gmra.mrb[24].mxu0 %v1729_v41  ;;  %763 = vmatmul.mubr.bf16.gmra.mrb[24].mxu1 %v1730_v42 }
  0x5a   :  { %1313 = vmatprep.mubr.msk.bf16.mxu0 %vm450_vm0, %v1731_v43  ;;  %1329 = vmatprep.mubr.msk.bf16.mxu1 %vm450_vm0, %v1733_v44 }
  0x61   :  { %643 = vmatmul.mubr.bf16.gmra.mrb[28].mxu0 %v1735_v45  ;;  %771 = vmatmul.mubr.bf16.gmra.mrb[28].mxu1 %v1736_v46 }
  0x62   :  { %1314 = vmatprep.mubr.msk.bf16.mxu0 %vm450_vm0, %v1737_v47  ;;  %1330 = vmatprep.mubr.msk.bf16.mxu1 %vm450_vm0, %v1739_v48 }
  0x69   :  { %651 = vmatmul.mubr.bf16.gmra.mrb[32].mxu0 %v1741_v49  ;;  %779 = vmatmul.mubr.bf16.gmra.mrb[32].mxu1 %v1742_v50 }
  0x6a   :  { %1315 = vmatprep.mubr.msk.bf16.mxu0 %vm450_vm0, %v1743_v51  ;;  %1331 = vmatprep.mubr.msk.bf16.mxu1 %vm450_vm0, %v1745_v52 }
  0x71   :  { %659 = vmatmul.mubr.bf16.gmra.mrb[36].mxu0 %v1747_v53  ;;  %787 = vmatmul.mubr.bf16.gmra.mrb[36].mxu1 %v1748_v54 }
  0x72   :  { %1316 = vmatprep.mubr.msk.bf16.mxu0 %vm450_vm0, %v1749_v55  ;;  %1332 = vmatprep.mubr.msk.bf16.mxu1 %vm450_vm0, %v1751_v56 }
  0x79   :  { %667 = vmatmul.mubr.bf16.gmra.mrb[40].mxu0 %v1753_v57  ;;  %795 = vmatmul.mubr.bf16.gmra.mrb[40].mxu1 %v1754_v58 }
  0x7a   :  { %1317 = vmatprep.mubr.msk.bf16.mxu0 %vm450_vm0, %v1755_v59  ;;  %1333 = vmatprep.mubr.msk.bf16.mxu1 %vm450_vm0, %v1757_v60 }
  0x81   :  { %675 = vmatmul.mubr.bf16.gmra.mrb[44].mxu0 %v1759_v61  ;;  %803 = vmatmul.mubr.bf16.gmra.mrb[44].mxu1 %v1760_v62 }
  0x82   :  { %1318 = vmatprep.mubr.msk.bf16.mxu0 %vm450_vm0, %v1761_v63  ;;  %1334 = vmatprep.mubr.msk.bf16.mxu1 %vm450_vm0, %v1763_v0 }
  0x89   :  { %683 = vmatmul.mubr.bf16.gmra.mrb[48].mxu0 %v1765_v1  ;;  %811 = vmatmul.mubr.bf16.gmra.mrb[48].mxu1 %v1766_v2 }
  0x8a   :  { %1319 = vmatprep.mubr.msk.bf16.mxu0 %vm450_vm0, %v1767_v3  ;;  %1335 = vmatprep.mubr.msk.bf16.mxu1 %vm450_vm0, %v1769_v4 }
  0x91   :  { %691 = vmatmul.mubr.bf16.gmra.mrb[52].mxu0 %v1771_v5  ;;  %819 = vmatmul.mubr.bf16.gmra.mrb[52].mxu1 %v1772_v6 }
  0x92   :  { %1320 = vmatprep.mubr.msk.bf16.mxu0 %vm450_vm0, %v1773_v7  ;;  %1336 = vmatprep.mubr.msk.bf16.mxu1 %vm450_vm0, %v1775_v8 }
  0x99   :  { %699 = vmatmul.mubr.bf16.gmra.mrb[56].mxu0 %v1777_v9  ;;  %827 = vmatmul.mubr.bf16.gmra.mrb[56].mxu1 %v1778_v10 }
  0x9a   :  { %1321 = vmatprep.mubr.msk.bf16.mxu0 %vm450_vm0, %v1779_v11  ;;  %1337 = vmatprep.mubr.msk.bf16.mxu1 %vm450_vm0, %v1781_v12 }
  0xa1   :  { %707 = vmatmul.mubr.bf16.gmra.mrb[60].mxu0 %v1783_v13  ;;  %835 = vmatmul.mubr.bf16.gmra.mrb[60].mxu1 %v1784_v14 }
  0xfc   :  { %v588_v16 = vpop.f32.mrb[0].mxu0  ;;  %v716_v17 = vpop.f32.mrb[0].mxu1 }
  0xfd   :  { %v589_v18 = vadd.f32 %v2064_v15, %v588_v16  ;;  %v717_v19 = vadd.f32 %v2064_v15, %v716_v17  ;;  %v590_v20 = vpop.f32.mrb[1].mxu0  ;;  %v718_v21 = vpop.f32.mrb[1].mxu1 }
  0xfe   :  { %v591_v22 = vpop.f32.mrb[2].mxu0  ;;  %v719_v23 = vpop.f32.mrb[2].mxu1 }
  0xff   :  { %v592_v24 = vadd.f32 %v2064_v15, %v591_v22  ;;  %v720_v25 = vadd.f32 %v2064_v15, %v719_v23  ;;  %v593_v26 = vpop.f32.mrb[3].mxu0  ;;  %v721_v27 = vpop.f32.mrb[3].mxu1  ;;  %v843_v28 = vmax.f32 %v589_v18, 0.0  ;;  %v875_v29 = vmax.f32 %v717_v19, 0.0 }
 0x101   :  { %v844_v30 = vmax.f32 %v592_v24, 0.0  ;;  %v876_v31 = vmax.f32 %v720_v25, 0.0 }
 0x103   :  { %v1469_v32 = vpack.c.bf16 %v844_v30, %v843_v28  ;;  %v1549_v33 = vpack.c.bf16 %v876_v31, %v875_v29 }
 0x104   :  { %v596_v34 = vpop.f32.mrb[4].mxu0  ;;  %v724_v35 = vpop.f32.mrb[4].mxu1 }
 0x105   :  { %1470 = vst [vmem:[%s2229_s3] sm:$0xff] %v1469_v32   ;;  %1641 = vst [vmem:[%s2229_s3 + $0x80] sm:$0xff] %v1549_v33   ;;  %v597_v36 = vadd.f32 %v2064_v15, %v596_v34  ;;  %v725_v37 = vadd.f32 %v2064_v15, %v724_v35  ;;  %v598_v38 = vpop.f32.mrb[5].mxu0  ;;  %v726_v39 = vpop.f32.mrb[5].mxu1 }
 0x106   :  { %v599_v40 = vpop.f32.mrb[6].mxu0  ;;  %v727_v41 = vpop.f32.mrb[6].mxu1 }
 0x107   :  { %v600_v42 = vadd.f32 %v2064_v15, %v599_v40  ;;  %v728_v43 = vadd.f32 %v2064_v15, %v727_v41  ;;  %v601_v44 = vpop.f32.mrb[7].mxu0  ;;  %v729_v45 = vpop.f32.mrb[7].mxu1  ;;  %v845_v46 = vmax.f32 %v597_v36, 0.0  ;;  %v877_v47 = vmax.f32 %v725_v37, 0.0 }
 0x109   :  { %v846_v48 = vmax.f32 %v600_v42, 0.0  ;;  %v878_v49 = vmax.f32 %v728_v43, 0.0 }
 0x10b   :  { %v1474_v50 = vpack.c.bf16 %v846_v48, %v845_v46  ;;  %v1554_v51 = vpack.c.bf16 %v878_v49, %v877_v47 }
 0x10c   :  { %v604_v52 = vpop.f32.mrb[8].mxu0  ;;  %v732_v53 = vpop.f32.mrb[8].mxu1 }
 0x10d   :  { %1626 = vst [vmem:[%s2229_s3 + $0x8] sm:$0xff] %v1474_v50   ;;  %1642 = vst [vmem:[%s2229_s3 + $0x88] sm:$0xff] %v1554_v51   ;;  %v605_v54 = vadd.f32 %v2064_v15, %v604_v52  ;;  %v733_v55 = vadd.f32 %v2064_v15, %v732_v53  ;;  %v606_v56 = vpop.f32.mrb[9].mxu0  ;;  %v734_v57 = vpop.f32.mrb[9].mxu1 }
 0x10e   :  { %v607_v58 = vpop.f32.mrb[10].mxu0  ;;  %v735_v59 = vpop.f32.mrb[10].mxu1 }
 0x10f   :  { %v608_v60 = vadd.f32 %v2064_v15, %v607_v58  ;;  %v736_v61 = vadd.f32 %v2064_v15, %v735_v59  ;;  %v609_v62 = vpop.f32.mrb[11].mxu0  ;;  %v737_v63 = vpop.f32.mrb[11].mxu1  ;;  %v847_v0 = vmax.f32 %v605_v54, 0.0  ;;  %v879_v1 = vmax.f32 %v733_v55, 0.0 }
 0x111   :  { %v848_v2 = vmax.f32 %v608_v60, 0.0  ;;  %v880_v3 = vmax.f32 %v736_v61, 0.0 }
 0x113   :  { %v1479_v4 = vpack.c.bf16 %v848_v2, %v847_v0  ;;  %v1559_v5 = vpack.c.bf16 %v880_v3, %v879_v1 }
 0x114   :  { %v612_v6 = vpop.f32.mrb[12].mxu0  ;;  %v740_v7 = vpop.f32.mrb[12].mxu1 }
 0x115   :  { %1627 = vst [vmem:[%s2229_s3 + $0x10] sm:$0xff] %v1479_v4   ;;  %1643 = vst [vmem:[%s2229_s3 + $0x90] sm:$0xff] %v1559_v5   ;;  %v613_v8 = vadd.f32 %v2064_v15, %v612_v6  ;;  %v741_v9 = vadd.f32 %v2064_v15, %v740_v7  ;;  %v614_v10 = vpop.f32.mrb[13].mxu0  ;;  %v742_v11 = vpop.f32.mrb[13].mxu1 }
 0x116   :  { %v615_v12 = vpop.f32.mrb[14].mxu0  ;;  %v743_v13 = vpop.f32.mrb[14].mxu1 }
 0x117   :  { %v616_v14 = vadd.f32 %v2064_v15, %v615_v12  ;;  %v744_v16 = vadd.f32 %v2064_v15, %v743_v13  ;;  %v617_v17 = vpop.f32.mrb[15].mxu0  ;;  %v745_v18 = vpop.f32.mrb[15].mxu1  ;;  %v849_v19 = vmax.f32 %v613_v8, 0.0  ;;  %v881_v20 = vmax.f32 %v741_v9, 0.0 }
 0x119   :  { %v850_v21 = vmax.f32 %v616_v14, 0.0  ;;  %v882_v22 = vmax.f32 %v744_v16, 0.0 }
 0x11b   :  { %v1484_v23 = vpack.c.bf16 %v850_v21, %v849_v19  ;;  %v1564_v24 = vpack.c.bf16 %v882_v22, %v881_v20 }
 0x11c   :  { %v620_v25 = vpop.f32.mrb[16].mxu0  ;;  %v748_v26 = vpop.f32.mrb[16].mxu1 }
 0x11d   :  { %1628 = vst [vmem:[%s2229_s3 + $0x18] sm:$0xff] %v1484_v23   ;;  %1644 = vst [vmem:[%s2229_s3 + $0x98] sm:$0xff] %v1564_v24   ;;  %v621_v27 = vadd.f32 %v2064_v15, %v620_v25  ;;  %v749_v28 = vadd.f32 %v2064_v15, %v748_v26  ;;  %v622_v29 = vpop.f32.mrb[17].mxu0  ;;  %v750_v30 = vpop.f32.mrb[17].mxu1 }
 0x11e   :  { %v623_v31 = vpop.f32.mrb[18].mxu0  ;;  %v751_v32 = vpop.f32.mrb[18].mxu1 }
 0x11f   :  { %v624_v33 = vadd.f32 %v2064_v15, %v623_v31  ;;  %v752_v34 = vadd.f32 %v2064_v15, %v751_v32  ;;  %v625_v35 = vpop.f32.mrb[19].mxu0  ;;  %v753_v36 = vpop.f32.mrb[19].mxu1  ;;  %v851_v37 = vmax.f32 %v621_v27, 0.0  ;;  %v883_v38 = vmax.f32 %v749_v28, 0.0 }
 0x121   :  { %v852_v39 = vmax.f32 %v624_v33, 0.0  ;;  %v884_v40 = vmax.f32 %v752_v34, 0.0 }
 0x123   :  { %v1489_v41 = vpack.c.bf16 %v852_v39, %v851_v37  ;;  %v1569_v42 = vpack.c.bf16 %v884_v40, %v883_v38 }
 0x124   :  { %v628_v43 = vpop.f32.mrb[20].mxu0  ;;  %v756_v44 = vpop.f32.mrb[20].mxu1 }
 0x125   :  { %1629 = vst [vmem:[%s2229_s3 + $0x20] sm:$0xff] %v1489_v41   ;;  %1645 = vst [vmem:[%s2229_s3 + $0xa0] sm:$0xff] %v1569_v42   ;;  %v629_v45 = vadd.f32 %v2064_v15, %v628_v43  ;;  %v757_v46 = vadd.f32 %v2064_v15, %v756_v44  ;;  %v630_v47 = vpop.f32.mrb[21].mxu0  ;;  %v758_v48 = vpop.f32.mrb[21].mxu1 }
 0x126   :  { %v631_v49 = vpop.f32.mrb[22].mxu0  ;;  %v759_v50 = vpop.f32.mrb[22].mxu1 }
 0x127   :  { %v632_v51 = vadd.f32 %v2064_v15, %v631_v49  ;;  %v760_v52 = vadd.f32 %v2064_v15, %v759_v50  ;;  %v633_v53 = vpop.f32.mrb[23].mxu0  ;;  %v761_v54 = vpop.f32.mrb[23].mxu1  ;;  %v853_v55 = vmax.f32 %v629_v45, 0.0  ;;  %v885_v56 = vmax.f32 %v757_v46, 0.0 }
 0x129   :  { %v854_v57 = vmax.f32 %v632_v51, 0.0  ;;  %v886_v58 = vmax.f32 %v760_v52, 0.0 }
 0x12b   :  { %v1494_v59 = vpack.c.bf16 %v854_v57, %v853_v55  ;;  %v1574_v60 = vpack.c.bf16 %v886_v58, %v885_v56 }
 0x12c   :  { %v636_v61 = vpop.f32.mrb[24].mxu0  ;;  %v764_v62 = vpop.f32.mrb[24].mxu1 }
 0x12d   :  { %1630 = vst [vmem:[%s2229_s3 + $0x28] sm:$0xff] %v1494_v59   ;;  %1646 = vst [vmem:[%s2229_s3 + $0xa8] sm:$0xff] %v1574_v60   ;;  %v637_v63 = vadd.f32 %v2064_v15, %v636_v61  ;;  %v765_v0 = vadd.f32 %v2064_v15, %v764_v62  ;;  %v638_v1 = vpop.f32.mrb[25].mxu0  ;;  %v766_v2 = vpop.f32.mrb[25].mxu1 }
 0x12e   :  { %v639_v3 = vpop.f32.mrb[26].mxu0  ;;  %v767_v4 = vpop.f32.mrb[26].mxu1 }
 0x12f   :  { %v640_v5 = vadd.f32 %v2064_v15, %v639_v3  ;;  %v768_v6 = vadd.f32 %v2064_v15, %v767_v4  ;;  %v641_v7 = vpop.f32.mrb[27].mxu0  ;;  %v769_v8 = vpop.f32.mrb[27].mxu1  ;;  %v855_v9 = vmax.f32 %v637_v63, 0.0  ;;  %v887_v10 = vmax.f32 %v765_v0, 0.0 }
 0x131   :  { %v856_v11 = vmax.f32 %v640_v5, 0.0  ;;  %v888_v12 = vmax.f32 %v768_v6, 0.0 }
 0x133   :  { %v1499_v13 = vpack.c.bf16 %v856_v11, %v855_v9  ;;  %v1579_v14 = vpack.c.bf16 %v888_v12, %v887_v10 }
 0x134   :  { %v644_v16 = vpop.f32.mrb[28].mxu0  ;;  %v772_v17 = vpop.f32.mrb[28].mxu1 }
 0x135   :  { %1631 = vst [vmem:[%s2229_s3 + $0x30] sm:$0xff] %v1499_v13   ;;  %1647 = vst [vmem:[%s2229_s3 + $0xb0] sm:$0xff] %v1579_v14   ;;  %v645_v18 = vadd.f32 %v2064_v15, %v644_v16  ;;  %v773_v19 = vadd.f32 %v2064_v15, %v772_v17  ;;  %v646_v20 = vpop.f32.mrb[29].mxu0  ;;  %v774_v21 = vpop.f32.mrb[29].mxu1 }
 0x136   :  { %v647_v22 = vpop.f32.mrb[30].mxu0  ;;  %v775_v23 = vpop.f32.mrb[30].mxu1 }
 0x137   :  { %v648_v24 = vadd.f32 %v2064_v15, %v647_v22  ;;  %v776_v25 = vadd.f32 %v2064_v15, %v775_v23  ;;  %v649_v26 = vpop.f32.mrb[31].mxu0  ;;  %v777_v27 = vpop.f32.mrb[31].mxu1  ;;  %v857_v28 = vmax.f32 %v645_v18, 0.0  ;;  %v889_v29 = vmax.f32 %v773_v19, 0.0 }
 0x139   :  { %v858_v30 = vmax.f32 %v648_v24, 0.0  ;;  %v890_v31 = vmax.f32 %v776_v25, 0.0 }
 0x13b   :  { %v1504_v32 = vpack.c.bf16 %v858_v30, %v857_v28  ;;  %v1584_v33 = vpack.c.bf16 %v890_v31, %v889_v29 }
 0x13c   :  { %v652_v34 = vpop.f32.mrb[32].mxu0  ;;  %v780_v35 = vpop.f32.mrb[32].mxu1 }
 0x13d   :  { %1632 = vst [vmem:[%s2229_s3 + $0x38] sm:$0xff] %v1504_v32   ;;  %1648 = vst [vmem:[%s2229_s3 + $0xb8] sm:$0xff] %v1584_v33   ;;  %v653_v36 = vadd.f32 %v2064_v15, %v652_v34  ;;  %v781_v37 = vadd.f32 %v2064_v15, %v780_v35  ;;  %v654_v38 = vpop.f32.mrb[33].mxu0  ;;  %v782_v39 = vpop.f32.mrb[33].mxu1 }
 0x13e   :  { %v655_v40 = vpop.f32.mrb[34].mxu0  ;;  %v783_v41 = vpop.f32.mrb[34].mxu1 }
 0x13f   :  { %v656_v42 = vadd.f32 %v2064_v15, %v655_v40  ;;  %v784_v43 = vadd.f32 %v2064_v15, %v783_v41  ;;  %v657_v44 = vpop.f32.mrb[35].mxu0  ;;  %v785_v45 = vpop.f32.mrb[35].mxu1  ;;  %v859_v46 = vmax.f32 %v653_v36, 0.0  ;;  %v891_v47 = vmax.f32 %v781_v37, 0.0 }
 0x141   :  { %v860_v48 = vmax.f32 %v656_v42, 0.0  ;;  %v892_v49 = vmax.f32 %v784_v43, 0.0 }
 0x143   :  { %v1509_v50 = vpack.c.bf16 %v860_v48, %v859_v46  ;;  %v1589_v51 = vpack.c.bf16 %v892_v49, %v891_v47 }
 0x144   :  { %v660_v52 = vpop.f32.mrb[36].mxu0  ;;  %v788_v53 = vpop.f32.mrb[36].mxu1 }
 0x145   :  { %1633 = vst [vmem:[%s2229_s3 + $0x40] sm:$0xff] %v1509_v50   ;;  %1649 = vst [vmem:[%s2229_s3 + $0xc0] sm:$0xff] %v1589_v51   ;;  %v661_v54 = vadd.f32 %v2064_v15, %v660_v52  ;;  %v789_v55 = vadd.f32 %v2064_v15, %v788_v53  ;;  %v662_v56 = vpop.f32.mrb[37].mxu0  ;;  %v790_v57 = vpop.f32.mrb[37].mxu1 }
 0x146   :  { %v663_v58 = vpop.f32.mrb[38].mxu0  ;;  %v791_v59 = vpop.f32.mrb[38].mxu1 }
 0x147   :  { %v664_v60 = vadd.f32 %v2064_v15, %v663_v58  ;;  %v792_v61 = vadd.f32 %v2064_v15, %v791_v59  ;;  %v665_v62 = vpop.f32.mrb[39].mxu0  ;;  %v793_v63 = vpop.f32.mrb[39].mxu1  ;;  %v861_v0 = vmax.f32 %v661_v54, 0.0  ;;  %v893_v1 = vmax.f32 %v789_v55, 0.0 }
 0x149   :  { %v862_v2 = vmax.f32 %v664_v60, 0.0  ;;  %v894_v3 = vmax.f32 %v792_v61, 0.0 }
 0x14b   :  { %v1514_v4 = vpack.c.bf16 %v862_v2, %v861_v0  ;;  %v1594_v5 = vpack.c.bf16 %v894_v3, %v893_v1 }
 0x14c   :  { %v668_v6 = vpop.f32.mrb[40].mxu0  ;;  %v796_v7 = vpop.f32.mrb[40].mxu1 }
 0x14d   :  { %1634 = vst [vmem:[%s2229_s3 + $0x48] sm:$0xff] %v1514_v4   ;;  %1650 = vst [vmem:[%s2229_s3 + $0xc8] sm:$0xff] %v1594_v5   ;;  %v669_v8 = vadd.f32 %v2064_v15, %v668_v6  ;;  %v797_v9 = vadd.f32 %v2064_v15, %v796_v7  ;;  %v670_v10 = vpop.f32.mrb[41].mxu0  ;;  %v798_v11 = vpop.f32.mrb[41].mxu1 }
 0x14e   :  { %v671_v12 = vpop.f32.mrb[42].mxu0  ;;  %v799_v13 = vpop.f32.mrb[42].mxu1 }
 0x14f   :  { %v672_v14 = vadd.f32 %v2064_v15, %v671_v12  ;;  %v800_v16 = vadd.f32 %v2064_v15, %v799_v13  ;;  %v673_v17 = vpop.f32.mrb[43].mxu0  ;;  %v801_v18 = vpop.f32.mrb[43].mxu1  ;;  %v863_v19 = vmax.f32 %v669_v8, 0.0  ;;  %v895_v20 = vmax.f32 %v797_v9, 0.0 }
 0x151   :  { %v864_v21 = vmax.f32 %v672_v14, 0.0  ;;  %v896_v22 = vmax.f32 %v800_v16, 0.0 }
 0x153   :  { %v1519_v23 = vpack.c.bf16 %v864_v21, %v863_v19  ;;  %v1599_v24 = vpack.c.bf16 %v896_v22, %v895_v20 }
 0x154   :  { %v676_v25 = vpop.f32.mrb[44].mxu0  ;;  %v804_v26 = vpop.f32.mrb[44].mxu1 }
 0x155   :  { %1635 = vst [vmem:[%s2229_s3 + $0x50] sm:$0xff] %v1519_v23   ;;  %1651 = vst [vmem:[%s2229_s3 + $0xd0] sm:$0xff] %v1599_v24   ;;  %v677_v27 = vadd.f32 %v2064_v15, %v676_v25  ;;  %v805_v28 = vadd.f32 %v2064_v15, %v804_v26  ;;  %v678_v29 = vpop.f32.mrb[45].mxu0  ;;  %v806_v30 = vpop.f32.mrb[45].mxu1 }
 0x156   :  { %v679_v31 = vpop.f32.mrb[46].mxu0  ;;  %v807_v32 = vpop.f32.mrb[46].mxu1 }
 0x157   :  { %v680_v33 = vadd.f32 %v2064_v15, %v679_v31  ;;  %v808_v34 = vadd.f32 %v2064_v15, %v807_v32  ;;  %v681_v35 = vpop.f32.mrb[47].mxu0  ;;  %v809_v36 = vpop.f32.mrb[47].mxu1  ;;  %v865_v37 = vmax.f32 %v677_v27, 0.0  ;;  %v897_v38 = vmax.f32 %v805_v28, 0.0 }
 0x159   :  { %v866_v39 = vmax.f32 %v680_v33, 0.0  ;;  %v898_v40 = vmax.f32 %v808_v34, 0.0 }
 0x15b   :  { %v1524_v41 = vpack.c.bf16 %v866_v39, %v865_v37  ;;  %v1604_v42 = vpack.c.bf16 %v898_v40, %v897_v38 }
 0x15c   :  { %v684_v43 = vpop.f32.mrb[48].mxu0  ;;  %v812_v44 = vpop.f32.mrb[48].mxu1 }
 0x15d   :  { %1636 = vst [vmem:[%s2229_s3 + $0x58] sm:$0xff] %v1524_v41   ;;  %1652 = vst [vmem:[%s2229_s3 + $0xd8] sm:$0xff] %v1604_v42   ;;  %v685_v45 = vadd.f32 %v2064_v15, %v684_v43  ;;  %v813_v46 = vadd.f32 %v2064_v15, %v812_v44  ;;  %v686_v47 = vpop.f32.mrb[49].mxu0  ;;  %v814_v48 = vpop.f32.mrb[49].mxu1 }
 0x15e   :  { %v687_v49 = vpop.f32.mrb[50].mxu0  ;;  %v815_v50 = vpop.f32.mrb[50].mxu1 }
 0x15f   :  { %v688_v51 = vadd.f32 %v2064_v15, %v687_v49  ;;  %v816_v52 = vadd.f32 %v2064_v15, %v815_v50  ;;  %v689_v53 = vpop.f32.mrb[51].mxu0  ;;  %v817_v54 = vpop.f32.mrb[51].mxu1  ;;  %v867_v55 = vmax.f32 %v685_v45, 0.0  ;;  %v899_v56 = vmax.f32 %v813_v46, 0.0 }
 0x161   :  { %v868_v57 = vmax.f32 %v688_v51, 0.0  ;;  %v900_v58 = vmax.f32 %v816_v52, 0.0 }
 0x163   :  { %v1529_v59 = vpack.c.bf16 %v868_v57, %v867_v55  ;;  %v1609_v60 = vpack.c.bf16 %v900_v58, %v899_v56 }
 0x164   :  { %v692_v61 = vpop.f32.mrb[52].mxu0  ;;  %v820_v62 = vpop.f32.mrb[52].mxu1 }
 0x165   :  { %1637 = vst [vmem:[%s2229_s3 + $0x60] sm:$0xff] %v1529_v59   ;;  %1653 = vst [vmem:[%s2229_s3 + $0xe0] sm:$0xff] %v1609_v60   ;;  %v693_v63 = vadd.f32 %v2064_v15, %v692_v61  ;;  %v821_v0 = vadd.f32 %v2064_v15, %v820_v62  ;;  %v694_v1 = vpop.f32.mrb[53].mxu0  ;;  %v822_v2 = vpop.f32.mrb[53].mxu1 }
 0x166   :  { %v695_v3 = vpop.f32.mrb[54].mxu0  ;;  %v823_v4 = vpop.f32.mrb[54].mxu1 }
 0x167   :  { %v696_v5 = vadd.f32 %v2064_v15, %v695_v3  ;;  %v824_v6 = vadd.f32 %v2064_v15, %v823_v4  ;;  %v697_v7 = vpop.f32.mrb[55].mxu0  ;;  %v825_v8 = vpop.f32.mrb[55].mxu1  ;;  %v869_v9 = vmax.f32 %v693_v63, 0.0  ;;  %v901_v10 = vmax.f32 %v821_v0, 0.0 }
 0x169   :  { %v870_v11 = vmax.f32 %v696_v5, 0.0  ;;  %v902_v12 = vmax.f32 %v824_v6, 0.0 }
 0x16b   :  { %v1534_v13 = vpack.c.bf16 %v870_v11, %v869_v9  ;;  %v1614_v14 = vpack.c.bf16 %v902_v12, %v901_v10 }
 0x16c   :  { %v700_v16 = vpop.f32.mrb[56].mxu0  ;;  %v828_v17 = vpop.f32.mrb[56].mxu1 }
 0x16d   :  { %1638 = vst [vmem:[%s2229_s3 + $0x68] sm:$0xff] %v1534_v13   ;;  %1654 = vst [vmem:[%s2229_s3 + $0xe8] sm:$0xff] %v1614_v14   ;;  %v701_v18 = vadd.f32 %v2064_v15, %v700_v16  ;;  %v829_v19 = vadd.f32 %v2064_v15, %v828_v17  ;;  %v702_v20 = vpop.f32.mrb[57].mxu0  ;;  %v830_v21 = vpop.f32.mrb[57].mxu1 }
 0x16e   :  { %v703_v22 = vpop.f32.mrb[58].mxu0  ;;  %v831_v23 = vpop.f32.mrb[58].mxu1 }
 0x16f   :  { %v704_v24 = vadd.f32 %v2064_v15, %v703_v22  ;;  %v832_v25 = vadd.f32 %v2064_v15, %v831_v23  ;;  %v705_v26 = vpop.f32.mrb[59].mxu0  ;;  %v833_v27 = vpop.f32.mrb[59].mxu1  ;;  %v871_v28 = vmax.f32 %v701_v18, 0.0  ;;  %v903_v29 = vmax.f32 %v829_v19, 0.0 }
 0x171   :  { %v872_v30 = vmax.f32 %v704_v24, 0.0  ;;  %v904_v31 = vmax.f32 %v832_v25, 0.0 }
 0x173   :  { %v1539_v32 = vpack.c.bf16 %v872_v30, %v871_v28  ;;  %v1619_v33 = vpack.c.bf16 %v904_v31, %v903_v29 }
 0x174   :  { %v708_v34 = vpop.f32.mrb[60].mxu0  ;;  %v836_v35 = vpop.f32.mrb[60].mxu1 }
 0x175   :  { %1639 = vst [vmem:[%s2229_s3 + $0x70] sm:$0xff] %v1539_v32   ;;  %1655 = vst [vmem:[%s2229_s3 + $0xf0] sm:$0xff] %v1619_v33   ;;  %v709_v36 = vadd.f32 %v2064_v15, %v708_v34  ;;  %v837_v37 = vadd.f32 %v2064_v15, %v836_v35  ;;  %v710_v38 = vpop.f32.mrb[61].mxu0  ;;  %v838_v39 = vpop.f32.mrb[61].mxu1 }
 0x176   :  { %v711_v40 = vpop.f32.mrb[62].mxu0  ;;  %v839_v41 = vpop.f32.mrb[62].mxu1 }
 0x177   :  { %v712_v42 = vadd.f32 %v2064_v15, %v711_v40  ;;  %v840_v43 = vadd.f32 %v2064_v15, %v839_v41  ;;  %v713_v44 = vpop.f32.mrb[63].mxu0  ;;  %v841_v45 = vpop.f32.mrb[63].mxu1  ;;  %v873_v46 = vmax.f32 %v709_v36, 0.0  ;;  %v905_v47 = vmax.f32 %v837_v37, 0.0 }
 0x179   :  { %v874_v48 = vmax.f32 %v712_v42, 0.0  ;;  %v906_v49 = vmax.f32 %v840_v43, 0.0 }
 0x17b   :  { %v1544_v50 = vpack.c.bf16 %v874_v48, %v873_v46  ;;  %v1624_v51 = vpack.c.bf16 %v906_v49, %v905_v47 }
 0x17d   :  { %1640 = vst [vmem:[%s2229_s3 + $0x78] sm:$0xff] %v1544_v50   ;;  %1656 = vst [vmem:[%s2229_s3 + $0xf8] sm:$0xff] %v1624_v51  }

</bundles_post_ra>
